<compile_context>
chip_gen: v7x
topology: tpu7x:2x2x1
jax: 0.10.0
libtpu: 0.0.40
codegen_flags: <defaults>
</compile_context>

<pallas_src>
import functools

import jax
import jax.numpy as jnp
from jax.experimental import pallas as pl
from jax.experimental.pallas import tpu as pltpu


LANE = 128  # TPU lane width; feature dims padded to this for lane-dense stores.


def _round_up(n, m):
    return ((n + m - 1) // m) * m


def _pick_tm(n_pad):
    """Largest dst tile that still yields >= 2 dst tiles (v7x megacore);
    tiny graphs fall back to a single tile."""
    for t in (512, 256, 128):
        if n_pad % t == 0 and n_pad // t >= 2:
            return t
    for t in (512, 256, 128):
        if n_pad % t == 0:
            return t
    return n_pad


def _pick_tkw(n_pad):
    """K tile over the relation-stacked (wide) axis.  Kept <= n_pad and dividing
    n_pad so every K block lies inside a single relation: block-sparsity
    granularity is then (dst_tile, relation, src_tile)."""
    for t in (1024, 512, 256, 128):
        if t <= n_pad and n_pad % t == 0:
            return t
    return n_pad


# ----------------------------- Pallas kernels ------------------------------


def _linear_kernel(x_ref, w_ref, b_ref, o_ref):
    o_ref[...] = (
        jnp.dot(x_ref[...], w_ref[...], preferred_element_type=jnp.float32)
        + b_ref[...]
    ).astype(o_ref.dtype)


def linear(x, w, b, *, tm):
    """x: (N_pad, Din_pad), w: (Din_pad, Dout_pad), b: (Dout_pad,).
    Row-tiled ("parallel" grid) matmul with lane-dense (padded) output."""
    n, din = x.shape
    dout = w.shape[1]
    return pl.pallas_call(
        _linear_kernel,
        out_shape=jax.ShapeDtypeStruct((n, dout), jnp.float32),
        grid_spec=pltpu.PrefetchScalarGridSpec(
            num_scalar_prefetch=0,
            grid=(n // tm,),
            in_specs=[
                pl.BlockSpec((tm, din), lambda i: (i, 0)),
                pl.BlockSpec((din, dout), lambda i: (0, 0)),
                pl.BlockSpec((1, dout), lambda i: (0, 0)),
            ],
            out_specs=pl.BlockSpec((tm, dout), lambda i: (i, 0)),
        ),
        compiler_params=pltpu.CompilerParams(
            dimension_semantics=("parallel",)),
    )(x, w, b.reshape(1, dout))


def _rel_linear_kernel(x_ref, w_ref, o_ref):
    o_ref[0] = jnp.dot(x_ref[...], w_ref[0],
                       preferred_element_type=jnp.float32).astype(o_ref.dtype)


def relation_linear(x, w_rel, *, tm, out_dtype=jnp.bfloat16):
    """Y[r] = X @ W_r for every relation.

    x: (N_pad, Din_pad) f32, w_rel: (R, Din_pad, Dout_pad) f32
    -> (R, N_pad, Dout_pad) in out_dtype (bf16 stream for the conv)."""
    n, din = x.shape
    r, _, dout = w_rel.shape
    return pl.pallas_call(
        _rel_linear_kernel,
        out_shape=jax.ShapeDtypeStruct((r, n, dout), out_dtype),
        grid_spec=pltpu.PrefetchScalarGridSpec(
            num_scalar_prefetch=0,
            grid=(n // tm, r),  # x tile stays VMEM-resident across the r loop
            in_specs=[
                pl.BlockSpec((tm, din), lambda i, j: (i, 0)),
                pl.BlockSpec((1, din, dout), lambda i, j: (j, 0, 0)),
            ],
            out_specs=pl.BlockSpec((1, tm, dout), lambda i, j: (j, i, 0)),
        ),
        compiler_params=pltpu.CompilerParams(
            dimension_semantics=("parallel", "arbitrary")),
    )(x, w_rel)


def _rgcn_conv_kernel(blk_ref, cnt_ref, a_ref, y_ref, xd_ref, wroot_ref, b_ref,
                      o_ref, *, apply_relu):
    """One (dst_tile, schedule_step) step of
       out = X @ W_root + bias + A_wide @ Y_stack.

    a_ref : (TM, TKW)  bf16 relation-stacked adjacency block (data-dependent)
    y_ref : (TKW, Dout) bf16 relation-transformed source features
    xd_ref: (TM, Din)  f32  destination features (root term, resident per tile)
    o_ref : (TM, Dout) f32  output block, resident across the schedule axis
    """
    i = pl.program_id(0)
    k = pl.program_id(1)
    nk = pl.num_programs(1)

    @pl.when(k == 0)
    def _():
        # Root term + bias hoisted to step 0: overlaps the adjacency pipeline
        # instead of serializing after the last DMA wait.
        o_ref[...] = (
            jnp.dot(xd_ref[...], wroot_ref[...],
                    preferred_element_type=jnp.float32)
            + b_ref[...])

    @pl.when(k < cnt_ref[i])
    def _():
        # bf16 operands, f32 accumulation on the MXU; one long-K dot per
        # visited nonzero (dst_tile, relation, src_tile) block.
        o_ref[...] += jnp.dot(a_ref[...], y_ref[...],
                              preferred_element_type=jnp.float32)

    if apply_relu:
        @pl.when(k == nk - 1)
        def _():
            o_ref[...] = jnp.maximum(o_ref[...], 0.0)


def rgcn_conv(x, a_wide, y_stack, w_root, bias, blk_list_flat, counts, *,
              apply_relu, tm, tkw, max_nk):
    """out = X @ W_root + bias + A_wide @ Y_stack   (ReLU optionally fused).

    x            : (N_pad, Din_pad)   f32
    a_wide       : (N_pad, R*N_pad)   bf16 relation-stacked mean adjacency
    y_stack      : (R*N_pad, Dout_pad) bf16
    blk_list_flat: (nti*max_nk,) int32 compacted nonzero K-block schedule
    counts       : (nti,)        int32 valid entries per dst tile
    """
    n_pad, din_pad = x.shape
    dout_pad = y_stack.shape[1]
    nti = n_pad // tm

    kernel = functools.partial(_rgcn_conv_kernel, apply_relu=apply_relu)

    a_map = lambda i, k, blk, cnt: (i, blk[i * max_nk + k])
    y_map = lambda i, k, blk, cnt: (blk[i * max_nk + k], 0)

    # Per-step VMEM bound: double-buffered bf16 A / Y blocks + resident f32
    # output / xd / W_root / bias.  Raised explicitly so larger tiles clear the
    # 16/32 MiB scoped defaults while staying inside v7x's 64 MiB physical VMEM.
    est = (2 * (tm * tkw + tkw * dout_pad) * 2
           + (tm * dout_pad + tm * din_pad + din_pad * dout_pad + dout_pad) * 8)
    vmem_limit = int(min(max(2 * est, 32 * 1024 * 1024), 60 * 1024 * 1024))

    return pl.pallas_call(
        kernel,
        out_shape=jax.ShapeDtypeStruct((n_pad, dout_pad), jnp.float32),
        grid_spec=pltpu.PrefetchScalarGridSpec(
            num_scalar_prefetch=2,
            grid=(nti, max_nk),
            in_specs=[
                # TODO(synk): sweep pipeline_mode=pl.Buffered(3) here if the
                # profile shows exposed adjacency DMA at large tiles.
                pl.BlockSpec((tm, tkw), a_map),
                pl.BlockSpec((tkw, dout_pad), y_map),
                pl.BlockSpec((tm, din_pad), lambda i, k, blk, cnt: (i, 0)),
                pl.BlockSpec((din_pad, dout_pad), lambda i, k, blk, cnt: (0, 0)),
                pl.BlockSpec((1, dout_pad), lambda i, k, blk, cnt: (0, 0)),
            ],
            out_specs=pl.BlockSpec((tm, dout_pad), lambda i, k, blk, cnt: (i, 0)),
        ),
        compiler_params=pltpu.CompilerParams(
            dimension_semantics=("parallel", "arbitrary"),
            vmem_limit_bytes=vmem_limit),
    )(blk_list_flat, counts, a_wide, y_stack, x, w_root,
      bias.reshape(1, dout_pad))


# ------------------------------- glue (JAX) --------------------------------


class ModelParams:
    num_entities = 20
    dense_node_feat_dim = 16
    n_additional_feat = 0
    transform_input = True
    gcn_dim = 32
    num_gcn_layers = 2
    num_relations = 4
    num_bases = 2
    drop_rgcn = 0.0          # dropout identity (eval mode)
    use_fast_rgcn = False
    use_sparse_feats = False
    use_scoring_head = None


def init_params(mp, key):
    keys = jax.random.split(key, 3 + 4 * mp.num_gcn_layers)
    p = {}
    p["embed"] = jax.random.normal(
        keys[0], (mp.num_entities, mp.dense_node_feat_dim), jnp.float32)
    in_dim = mp.dense_node_feat_dim + mp.n_additional_feat
    if mp.transform_input:
        p["lin_w"] = 0.1 * jax.random.normal(
            keys[1], (in_dim, mp.gcn_dim), jnp.float32)
        p["lin_b"] = 0.1 * jax.random.normal(keys[2], (mp.gcn_dim,), jnp.float32)
        in_dim = mp.gcn_dim
    layers = []
    k = 3
    for _ in range(mp.num_gcn_layers):
        basis = 0.1 * jax.random.normal(
            keys[k], (mp.num_bases, in_dim, mp.gcn_dim), jnp.float32)
        comp = 0.1 * jax.random.normal(
            keys[k + 1], (mp.num_relations, mp.num_bases), jnp.float32)
        root = 0.1 * jax.random.normal(
            keys[k + 2], (in_dim, mp.gcn_dim), jnp.float32)
        bias = 0.1 * jax.random.normal(keys[k + 3], (mp.gcn_dim,), jnp.float32)
        layers.append({"basis": basis, "comp": comp, "root": root, "bias": bias})
        in_dim = mp.gcn_dim
        k += 4
    p["conv_layers"] = layers
    return p


def build_adjacency(edge_index, edge_type, num_nodes, num_relations):
    """A[r, dst, src] = 1/deg_r(dst); dense mean-aggregation adjacency.

    # TODO(synk): dense (R, N, N) construction is a scalability hazard at large
    # N; a CSR/segment layout with data-dependent index_maps would replace it.
    """
    src, dst = edge_index[0], edge_index[1]
    adj = jnp.zeros((num_relations, num_nodes, num_nodes), jnp.float32)
    adj = adj.at[edge_type, dst, src].add(1.0)
    deg = adj.sum(axis=-1, keepdims=True)
    return adj / jnp.where(deg > 0, deg, 1.0)


def build_wide_adjacency(adj):
    """(R, N, N) -> (N, R*N) with column index r*N + src (K = relation-stacked)."""
    r, n, _ = adj.shape
    return jnp.transpose(adj, (1, 0, 2)).reshape(n, r * n)


def build_block_schedule(a_wide, tm, tkw):
    """Compacted per-dst-tile schedule of nonzero K blocks (+ counts).

    Only these blocks are visited by the conv grid, so empty
    (dst_tile, relation, src_tile) adjacency blocks cost neither DMA nor MXU.
    Padded slots repeat the last valid index so their DMA is elided (same
    block index as the previous step)."""
    n_pad, k_tot = a_wide.shape
    nti, nk_tot = n_pad // tm, k_tot // tkw
    nz = (a_wide != 0).reshape(nti, tm, nk_tot, tkw).any(axis=(1, 3))  # (nti, nk)
    counts = nz.sum(axis=1).astype(jnp.int32)
    # NOTE: int() forces a host sync; keeps the pallas_call grid extent static.
    max_nk = max(1, int(counts.max()))
    order = jnp.argsort(jnp.where(nz, 0, 1).astype(jnp.int32), axis=1,
                        stable=True)                       # nonzero blocks first
    blk_list = order[:, :max_nk].astype(jnp.int32)
    pad_idx = jnp.minimum(jnp.arange(max_nk, dtype=jnp.int32)[None, :],
                          jnp.maximum(counts[:, None] - 1, 0))
    blk_list = jnp.take_along_axis(blk_list, pad_idx, axis=1)
    return blk_list.reshape(-1), counts, max_nk


def rgcn_forward(params, mp, node_ids, edge_index, edge_type):
    n = node_ids.shape[0]
    n_pad = _round_up(max(n, LANE), LANE)
    f = params["embed"].shape[1]
    f_pad = _round_up(f, LANE)
    g = mp.gcn_dim
    g_pad = _round_up(g, LANE)   # TODO(synk): 4x lane-padding waste (32 -> 128).
    num_rel = mp.num_relations

    # TODO(synk): embedding lookup (gather) kept in plain JAX glue.
    x = jnp.take(params["embed"], node_ids, axis=0)
    x = jnp.pad(x, ((0, n_pad - n), (0, f_pad - f)))

    tm = _pick_tm(n_pad)
    tkw = _pick_tkw(n_pad)

    if mp.transform_input:
        lin_w = jnp.pad(params["lin_w"], ((0, f_pad - f), (0, g_pad - g)))
        lin_b = jnp.pad(params["lin_b"], (0, g_pad - g))
        # TODO(synk): this output round-trips HBM before layer 0; fully fusing
        # it into the first conv would fold W_lin into W_r / W_root.
        x = linear(x, lin_w, lin_b, tm=tm)
        in_pad = g_pad
    else:
        in_pad = f_pad

    if mp.num_gcn_layers == 0:
        return x[:n, :(g if mp.transform_input else f)]

    adj = build_adjacency(edge_index, edge_type, n_pad, num_rel)
    a_wide = build_wide_adjacency(adj)
    blk_list_flat, counts, max_nk = build_block_schedule(a_wide, tm, tkw)
    # bf16 adjacency stream: halves HBM traffic on the dominant stream and runs
    # the MXU at native bf16 rate; accumulation stays f32 in the kernel.
    a_wide = a_wide.astype(jnp.bfloat16)

    out = x
    n_layers = mp.num_gcn_layers
    for li, layer in enumerate(params["conv_layers"]):
        # Basis decomposition (tiny contraction) kept in glue, as in the original.
        w_rel = jnp.einsum("rb,bio->rio", layer["comp"], layer["basis"])
        din, dout = w_rel.shape[1], w_rel.shape[2]
        w_rel_p = jnp.pad(w_rel, ((0, 0), (0, in_pad - din), (0, g_pad - dout)))
        w_root_p = jnp.pad(layer["root"], ((0, in_pad - din), (0, g_pad - dout)))
        bias_p = jnp.pad(layer["bias"], (0, g_pad - dout))
        # Y_r = X @ W_r once per layer, relation-stacked along K (bf16 stream).
        y = relation_linear(out, w_rel_p, tm=tm)          # (R, N_pad, G_pad) bf16
        y_stack = y.reshape(num_rel * n_pad, g_pad)
        apply_relu = li != (n_layers - 1)  # relu+dropout except after last layer
        out = rgcn_conv(out, a_wide, y_stack, w_root_p, bias_p,
                        blk_list_flat, counts,
                        apply_relu=apply_relu, tm=tm, tkw=tkw, max_nk=max_nk)
        in_pad = g_pad
        # TODO(synk): dropout omitted (p=drop_rgcn, identity in eval mode).
    return out[:n, :g]


def rgcn_forward_ref(params, mp, node_ids, edge_index, edge_type):
    """Pure-JAX f32 reference for correctness checking (unpadded, dense)."""
    x = jnp.take(params["embed"], node_ids, axis=0)
    if mp.transform_input:
        x = x @ params["lin_w"] + params["lin_b"]
    adj = build_adjacency(edge_index, edge_type, x.shape[0], mp.num_relations)
    out = x
    for li, layer in enumerate(params["conv_layers"]):
        w_rel = jnp.einsum("rb,bio->rio", layer["comp"], layer["basis"])
        out = (out @ layer["root"] + layer["bias"]
               + jnp.einsum("rij,jk,rkl->il", adj, out, w_rel))
        if li != mp.num_gcn_layers - 1:
            out = jnp.maximum(out, 0.0)
    return out


if __name__ == "__main__":
    mp = ModelParams()
    key = jax.random.PRNGKey(0)
    kp, kn, ke, kt = jax.random.split(key, 4)

    params = init_params(mp, kp)

    num_nodes = 8
    num_edges = 16
    node_ids = jax.random.randint(kn, (num_nodes,), 0, mp.num_entities,
                                  dtype=jnp.int32)
    edge_index = jax.random.randint(ke, (2, num_edges), 0, num_nodes,
                                    dtype=jnp.int32)
    edge_type = jax.random.randint(kt, (num_edges,), 0, mp.num_relations,
                                   dtype=jnp.int32)

    out = rgcn_forward(params, mp, node_ids, edge_index, edge_type)
    out = jax.block_until_ready(out)

    ref = rgcn_forward_ref(params, mp, node_ids, edge_index, edge_type)
    assert out.shape == (num_nodes, mp.gcn_dim)
    # Tolerance loosened for the bf16 adjacency / Y streams (f32 accumulation).
    assert jnp.allclose(out, ref, atol=2e-2, rtol=2e-2), "mismatch vs reference"

    print("KERNEL_OK")
</pallas_src>

<mosaic_0001>
module attributes {stable_mosaic.version = 11 : i64} {
  func.func @_linear_kernel(%arg0: i32, %arg1: memref<128x128xf32, #tpu.memory_space<vmem>>, %arg2: memref<128x128xf32, #tpu.memory_space<vmem>>, %arg3: memref<1x128xf32, #tpu.memory_space<vmem>>, %arg4: memref<128x128xf32, #tpu.memory_space<vmem>>) attributes {dimension_semantics = [#tpu.dimension_semantics<parallel>], iteration_bounds = array<i64: 1>, scalar_prefetch = 0 : i64, scratch_operands = 0 : i64, tpu.core_type = #tpu.core_type<tc>, window_params = [{transform_indices = @transform_0, window_bounds = array<i64: 128, 128>}, {pipeline_mode = #tpu.pipeline_mode<synchronous>, transform_indices = @transform_1, window_bounds = array<i64: 128, 128>}, {pipeline_mode = #tpu.pipeline_mode<synchronous>, transform_indices = @transform_2, window_bounds = array<i64: 1, 128>}, {transform_indices = @transform_3, window_bounds = array<i64: 128, 128>}]} {
    %c0 = arith.constant 0 : index
    %c0_0 = arith.constant 0 : index
    %0 = vector.load %arg1[%c0, %c0_0] : memref<128x128xf32, #tpu.memory_space<vmem>>, vector<128x128xf32>
    %c0_1 = arith.constant 0 : index
    %c0_2 = arith.constant 0 : index
    %1 = vector.load %arg2[%c0_1, %c0_2] : memref<128x128xf32, #tpu.memory_space<vmem>>, vector<128x128xf32>
    %cst = arith.constant dense<0.000000e+00> : vector<128x128xf32>
    %2 = tpu.matmul %0, %1, %cst {dimension_numbers = #tpu.dot_dimension_numbers<[1], [0], [0], [1], [0, 0, 1, 1], [], []>} : vector<128x128xf32>, vector<128x128xf32>, vector<128x128xf32> -> vector<128x128xf32>
    %c0_3 = arith.constant 0 : index
    %c0_4 = arith.constant 0 : index
    %3 = vector.load %arg3[%c0_3, %c0_4] : memref<1x128xf32, #tpu.memory_space<vmem>>, vector<1x128xf32>
    %4 = vector.broadcast %3 : vector<1x128xf32> to vector<128x128xf32>
    %5 = arith.addf %2, %4 : vector<128x128xf32>
    %c0_5 = arith.constant 0 : index
    %c0_6 = arith.constant 0 : index
    %6 = vector.load %arg4[%c0_5, %c0_6] : memref<128x128xf32, #tpu.memory_space<vmem>>, vector<128x128xf32>
    tpu.vector_store %arg4[%c0_5, %c0_6], %5 {strides = array<i32>} : memref<128x128xf32, #tpu.memory_space<vmem>>, vector<128x128xf32>,
    return
  }
  func.func @transform_0(%arg0: i32) -> (i32, i32) {
    %c0_i32 = arith.constant 0 : i32
    %c0_i32_0 = arith.constant 0 : i32
    return %arg0, %c0_i32 : i32, i32
  }
  func.func @transform_1(%arg0: i32) -> (i32, i32) {
    %c0_i32 = arith.constant 0 : i32
    %c0_i32_0 = arith.constant 0 : i32
    %c0_i32_1 = arith.constant 0 : i32
    return %c0_i32, %c0_i32_0 : i32, i32
  }
  func.func @transform_2(%arg0: i32) -> (i32, i32) {
    %c0_i32 = arith.constant 0 : i32
    %c0_i32_0 = arith.constant 0 : i32
    %c0_i32_1 = arith.constant 0 : i32
    return %c0_i32, %c0_i32_0 : i32, i32
  }
  func.func @transform_3(%arg0: i32) -> (i32, i32) {
    %c0_i32 = arith.constant 0 : i32
    %c0_i32_0 = arith.constant 0 : i32
    return %arg0, %c0_i32 : i32, i32
  }
}

</mosaic_0001>

<bundles_post_ra>
// kernel: tpu_custom_call.1
= control target key start
LH: loop header
LB: loop body
LE: loop exit
PB: predicated region body
PF: predicated region fallthrough
CT: control target
= control target key end

     0   :  { %8 = vsyncpa [#allocation3], 0  ;;  %s548_s0 = inlined_call_operand.hbm [shape: f32[128,128], index: 0, kind: input, shape index: {}]   ;;  %s549_s1 = inlined_call_operand.hbm [shape: f32[128,128], index: 1, kind: input, shape index: {}]   ;;  %s550_s2 = inlined_call_operand.vmem [shape: f32[1,128], index: 2, kind: input, shape index: {}]   ;;  %s551_s3 = inlined_call_operand.hbm [shape: f32[128,128], index: 3, kind: output, shape index: {}]  }
   0x1   :  { %9 = vsyncpa [#allocation6], 0 }
   0x2   :  { %10 = vsyncpa [#allocation4], 0  ;;  %s475_s12 = smov [#allocation2]   ;;  %s403_s16 = scalar_lea.hbm %s548_s0, 2048 }
   0x3   :  { %s16_s13 = sshll.u32 %s475_s12, 4  ;;  %p404_p0 = scmp.ne.s32.totalorder %s548_s0, %s403_s16  ;;  %s17_s13 = int_to_ptr.vmem [resolvable:$true] %s16_s13 }
   0x4   :  { %p407_p1 = scmp.lt.u32.totalorder %s403_s16, %s548_s0 }
   0x6   :  { %p409_p2 = pnand %p407_p1, %p404_p0 }
   0x8   :  { %412 = shalt.err (!%p409_p2)
}
   0x9   :  { %s413_s21 = scalar_lea.vmem %s17_s13, 2048  ;;  %p418_p4 = scmp.lt.s32.totalorder %s17_s13, %s17_s13 }
   0xa   :  { %p414_p3 = scmp.ne.s32.totalorder %s17_s13, %s413_s21  ;;  %p419_p5 = scmp.lt.s32.totalorder %s413_s21, %s413_s21 }
   0xc   :  { %p420_p6 = por %p419_p5, %p418_p4 }
   0xe   :  { %p421_p7 = pnand %p420_p6, %p414_p3 }
  0x10   :  { %424 = shalt.err (!%p421_p7)
}
  0x11   :  { %s476_s22 = smov 128   ;;  %s477_s23 = smov 8  }
  0x12   :  { %22 = dma.hbm_to_vmem [thread:$0]  %s548_s0, 2048, %s17_s13, [#allocation3], %s476_s22, %s476_s22, %s477_s23  }
  0x13   :  { %s478_s26 = smov [#allocation5]   ;;  %s425_s30 = scalar_lea.hbm %s549_s1, 2048 }
  0x14   :  { %s28_s27 = sshll.u32 %s478_s26, 4  ;;  %p426_p8 = scmp.ne.s32.totalorder %s549_s1, %s425_s30  ;;  %s29_s27 = int_to_ptr.vmem [resolvable:$true] %s28_s27 }
  0x15   :  { %p429_p9 = scmp.lt.u32.totalorder %s425_s30, %s549_s1 }
  0x17   :  { %p431_p10 = pnand %p429_p9, %p426_p8 }
  0x19   :  { %434 = shalt.err (!%p431_p10)
}
  0x1a   :  { %s435_s8 = scalar_lea.vmem %s29_s27, 2048  ;;  %p440_p12 = scmp.lt.s32.totalorder %s29_s27, %s29_s27 }
  0x1b   :  { %p436_p11 = scmp.ne.s32.totalorder %s29_s27, %s435_s8  ;;  %p441_p13 = scmp.lt.s32.totalorder %s435_s8, %s435_s8 }
  0x1d   :  { %p442_p0 = por %p441_p13, %p440_p12 }
  0x1f   :  { %p443_p1 = pnand %p442_p0, %p436_p11 }
  0x21   :  { %446 = shalt.err (!%p443_p1)
}
  0x22   :  { %34 = dma.hbm_to_vmem [thread:$0]  %s549_s1, 2048, %s29_s27, [#allocation6], %s476_s22, %s476_s22, %s477_s23  }
  0x23   :  { %469 = dma.done.wait [#allocation3], 2048  }
  0x24   :  { %470 = vsyncadd [#allocation3], 4294965248 }
  0x25   :  { %471 = dma.done.wait [#allocation6], 2048  }
  0x26   :  { %472 = vsyncadd [#allocation6], 4294965248  ;;  %v59_v0 = vld [vmem:[#allocation5] sm:$0xff]  ;;  %v60_v1 = vld [vmem:[#allocation5 + $0x8] sm:$0xff] }
  0x27   :  { %v61_v2 = vld [vmem:[#allocation5 + $0x10] sm:$0xff]  ;;  %v350_v3 = vpack.c.bf16 %v60_v1, %v59_v0  ;;  %v62_v4 = vld [vmem:[#allocation5 + $0x18] sm:$0xff]  ;;  %v63_v6 = vld [vmem:[#allocation5 + $0x20] sm:$0xff] }
  0x28   :  { %v354_v5 = vpack.c.bf16 %v62_v4, %v61_v2  ;;  %v64_v7 = vld [vmem:[#allocation5 + $0x28] sm:$0xff]  ;;  %v43_v9 = vld [vmem:[#allocation2] sm:$0xff]  ;;  %v65_v11 = vld [vmem:[#allocation5 + $0x30] sm:$0xff] }
  0x29   :  { %351 = vmatprep.subr.bf16.mxu0 %v350_v3  ;;  %382 = vmatprep.subr.bf16.mxu1 %v350_v3  ;;  %v358_v8 = vpack.c.bf16 %v64_v7, %v63_v6  ;;  %v51_v10 = vld [vmem:[#allocation2 + $0x40] sm:$0xff]  ;;  %v66_v12 = vld [vmem:[#allocation5 + $0x38] sm:$0xff]  ;;  %v68_v15 = vld [vmem:[#allocation5 + $0x48] sm:$0xff] }
  0x2a   :  { %353 = vmatpush3.bf16.msra.mxu0 %v350_v3  ;;  %390 = vmatpush3.bf16.msra.mxu1 %v350_v3  ;;  %v362_v13 = vpack.c.bf16 %v66_v12, %v65_v11  ;;  %v67_v14 = vld [vmem:[#allocation5 + $0x40] sm:$0xff]  ;;  %v69_v17 = vld [vmem:[#allocation5 + $0x50] sm:$0xff]  ;;  %v70_v18 = vld [vmem:[#allocation5 + $0x58] sm:$0xff] }
  0x2b   :  { %355 = vmatprep.subr.bf16.mxu0 %v354_v5  ;;  %383 = vmatprep.subr.bf16.mxu1 %v354_v5  ;;  %v366_v16 = vpack.c.bf16 %v68_v15, %v67_v14  ;;  %v370_v19 = vpack.c.bf16 %v70_v18, %v69_v17  ;;  %v71_v20 = vld [vmem:[#allocation5 + $0x60] sm:$0xff]  ;;  %v72_v21 = vld [vmem:[#allocation5 + $0x68] sm:$0xff]  ;;  %v73_v23 = vld [vmem:[#allocation5 + $0x70] sm:$0xff] }
  0x2c   :  { %326 = vmatprep.mubr.f32.mxu0 %v43_v9  ;;  %338 = vmatprep.mubr.f32.mxu1 %v51_v10  ;;  %v374_v22 = vpack.c.bf16 %v72_v21, %v71_v20  ;;  %v74_v24 = vld [vmem:[#allocation5 + $0x78] sm:$0xff]  ;;  %v44_v26 = vld [vmem:[#allocation2 + $0x8] sm:$0xff]  ;;  %v45_v28 = vld [vmem:[#allocation2 + $0x10] sm:$0xff] }
  0x2d   :  { %v378_v25 = vpack.c.bf16 %v74_v24, %v73_v23  ;;  %v52_v27 = vld [vmem:[#allocation2 + $0x48] sm:$0xff]  ;;  %v53_v29 = vld [vmem:[#allocation2 + $0x50] sm:$0xff]  ;;  %v46_v30 = vld [vmem:[#allocation2 + $0x18] sm:$0xff] }
  0x2e   :  { %357 = vmatpush3.bf16.msra.mxu0 %v354_v5  ;;  %391 = vmatpush3.bf16.msra.mxu1 %v354_v5  ;;  %v54_v31 = vld [vmem:[#allocation2 + $0x58] sm:$0xff]  ;;  %v47_v32 = vld [vmem:[#allocation2 + $0x20] sm:$0xff]  ;;  %v48_v34 = vld [vmem:[#allocation2 + $0x28] sm:$0xff] }
  0x2f   :  { %359 = vmatprep.subr.bf16.mxu0 %v358_v8  ;;  %384 = vmatprep.subr.bf16.mxu1 %v358_v8  ;;  %v55_v33 = vld [vmem:[#allocation2 + $0x60] sm:$0xff]  ;;  %v56_v35 = vld [vmem:[#allocation2 + $0x68] sm:$0xff]  ;;  %v49_v36 = vld [vmem:[#allocation2 + $0x30] sm:$0xff] }
  0x30   :  { %v57_v37 = vld [vmem:[#allocation2 + $0x70] sm:$0xff]  ;;  %v50_v38 = vld [vmem:[#allocation2 + $0x38] sm:$0xff]  ;;  %v261_v40 = vld [vmem:[%s550_s2] ss:$0 sm:$0xff]  ;;  %s479_s2 = smov [#allocation7]  }
  0x31   :  { %v58_v39 = vld [vmem:[#allocation2 + $0x78] sm:$0xff]  ;;  %s248_s11 = sshll.u32 %s479_s2, 4  ;;  %s249_s11 = int_to_ptr.vmem [resolvable:$true] %s248_s11 }
  0x32   :  { %361 = vmatpush3.bf16.msra.mxu0 %v358_v8  ;;  %392 = vmatpush3.bf16.msra.mxu1 %v358_v8  ;;  %s447_s12 = scalar_lea.vmem %s249_s11, 2048  ;;  %p452_p3 = scmp.lt.s32.totalorder %s249_s11, %s249_s11 }
  0x33   :  { %363 = vmatprep.subr.bf16.mxu0 %v362_v13  ;;  %385 = vmatprep.subr.bf16.mxu1 %v362_v13  ;;  %p448_p2 = scmp.ne.s32.totalorder %s249_s11, %s447_s12  ;;  %p453_p4 = scmp.lt.s32.totalorder %s447_s12, %s447_s12 }
  0x35   :  { %p454_p5 = por %p453_p4, %p452_p3 }
  0x36   :  { %365 = vmatpush3.bf16.msra.mxu0 %v362_v13  ;;  %393 = vmatpush3.bf16.msra.mxu1 %v362_v13 }
  0x37   :  { %367 = vmatprep.subr.bf16.mxu0 %v366_v16  ;;  %386 = vmatprep.subr.bf16.mxu1 %v366_v16  ;;  %p455_p6 = pnand %p454_p5, %p448_p2 }
  0x3a   :  { %369 = vmatpush3.bf16.msra.mxu0 %v366_v16  ;;  %394 = vmatpush3.bf16.msra.mxu1 %v366_v16 }
  0x3b   :  { %371 = vmatprep.subr.bf16.mxu0 %v370_v19  ;;  %387 = vmatprep.subr.bf16.mxu1 %v370_v19 }
  0x3e   :  { %373 = vmatpush3.bf16.msra.mxu0 %v370_v19  ;;  %395 = vmatpush3.bf16.msra.mxu1 %v370_v19 }
  0x3f   :  { %375 = vmatprep.subr.bf16.mxu0 %v374_v22  ;;  %388 = vmatprep.subr.bf16.mxu1 %v374_v22 }
  0x42   :  { %377 = vmatpush3.bf16.msra.mxu0 %v374_v22  ;;  %396 = vmatpush3.bf16.msra.mxu1 %v374_v22 }
  0x43   :  { %379 = vmatprep.subr.bf16.mxu0 %v378_v25  ;;  %389 = vmatprep.subr.bf16.mxu1 %v378_v25 }
  0x46   :  { %381 = vmatpush3.bf16.msra.mxu0 %v378_v25  ;;  %397 = vmatpush3.bf16.msra.mxu1 %v378_v25 }
  0x49   :  { %327 = vmatmul.mubr.f32.vlgmr.msra.gmra.mrb[0].mxu0 %v44_v26  ;;  %339 = vmatmul.mubr.f32.vlgmr.msra.gmra.mrb[0].mxu1 %v52_v27 }
  0x4a   :  { %329 = vmatprep.mubr.f32.mxu0 %v45_v28  ;;  %341 = vmatprep.mubr.f32.mxu1 %v53_v29 }
  0x4d   :  { %330 = vmatmul.mubr.f32.gmra.mrb[2].mxu0 %v46_v30  ;;  %342 = vmatmul.mubr.f32.gmra.mrb[2].mxu1 %v54_v31 }
  0x4e   :  { %332 = vmatprep.mubr.f32.mxu0 %v47_v32  ;;  %344 = vmatprep.mubr.f32.mxu1 %v55_v33 }
  0x51   :  { %333 = vmatmul.mubr.f32.gmra.mrb[4].mxu0 %v48_v34  ;;  %345 = vmatmul.mubr.f32.gmra.mrb[4].mxu1 %v56_v35 }
  0x52   :  { %335 = vmatprep.mubr.f32.mxu0 %v49_v36  ;;  %347 = vmatprep.mubr.f32.mxu1 %v57_v37 }
  0x55   :  { %336 = vmatmul.mubr.f32.gmra.mrb[6].mxu0 %v50_v38  ;;  %348 = vmatmul.mubr.f32.gmra.mrb[6].mxu1 %v58_v39 }
 0x11c   :  { %v328_v41 = vpop.f32.mrb[0].mxu0  ;;  %v340_v42 = vpop.f32.mrb[0].mxu1 }
 0x11d   :  { %v154_v43 = vadd.f32 %v328_v41, %v261_v40  ;;  %v194_v44 = vadd.f32 %v340_v42, %v261_v40  ;;  %v148_v45 = vpop.f32.mrb[1].mxu0  ;;  %v188_v46 = vpop.f32.mrb[1].mxu1 }
 0x11e   :  { %v149_v47 = vadd.f32 %v261_v40, %v148_v45  ;;  %v189_v48 = vadd.f32 %v261_v40, %v188_v46 }
 0x11f   :  { %228 = vst [vmem:[#allocation7 + $0x8] sm:$0xff] %v154_v43  ;;  %236 = vst [vmem:[#allocation7 + $0x48] sm:$0xff] %v194_v44 }
 0x120   :  { %227 = vst [vmem:[#allocation7] sm:$0xff] %v149_v47  ;;  %235 = vst [vmem:[#allocation7 + $0x40] sm:$0xff] %v189_v48  ;;  %v331_v49 = vpop.f32.mrb[2].mxu0  ;;  %v343_v50 = vpop.f32.mrb[2].mxu1 }
 0x121   :  { %v164_v51 = vadd.f32 %v331_v49, %v261_v40  ;;  %v204_v52 = vadd.f32 %v343_v50, %v261_v40  ;;  %v158_v53 = vpop.f32.mrb[3].mxu0  ;;  %v198_v54 = vpop.f32.mrb[3].mxu1 }
 0x122   :  { %v159_v55 = vadd.f32 %v261_v40, %v158_v53  ;;  %v199_v56 = vadd.f32 %v261_v40, %v198_v54 }
 0x123   :  { %230 = vst [vmem:[#allocation7 + $0x18] sm:$0xff] %v164_v51  ;;  %238 = vst [vmem:[#allocation7 + $0x58] sm:$0xff] %v204_v52 }
 0x124   :  { %229 = vst [vmem:[#allocation7 + $0x10] sm:$0xff] %v159_v55  ;;  %237 = vst [vmem:[#allocation7 + $0x50] sm:$0xff] %v199_v56  ;;  %v334_v57 = vpop.f32.mrb[4].mxu0  ;;  %v346_v58 = vpop.f32.mrb[4].mxu1 }
 0x125   :  { %v174_v59 = vadd.f32 %v334_v57, %v261_v40  ;;  %v214_v60 = vadd.f32 %v346_v58, %v261_v40  ;;  %v168_v61 = vpop.f32.mrb[5].mxu0  ;;  %v208_v62 = vpop.f32.mrb[5].mxu1 }
 0x126   :  { %v169_v63 = vadd.f32 %v261_v40, %v168_v61  ;;  %v209_v0 = vadd.f32 %v261_v40, %v208_v62 }
 0x127   :  { %232 = vst [vmem:[#allocation7 + $0x28] sm:$0xff] %v174_v59  ;;  %240 = vst [vmem:[#allocation7 + $0x68] sm:$0xff] %v214_v60 }
 0x128   :  { %231 = vst [vmem:[#allocation7 + $0x20] sm:$0xff] %v169_v63  ;;  %239 = vst [vmem:[#allocation7 + $0x60] sm:$0xff] %v209_v0  ;;  %v337_v1 = vpop.f32.mrb[6].mxu0  ;;  %v349_v2 = vpop.f32.mrb[6].mxu1 }
 0x129   :  { %v184_v3 = vadd.f32 %v337_v1, %v261_v40  ;;  %v224_v4 = vadd.f32 %v349_v2, %v261_v40  ;;  %v178_v5 = vpop.f32.mrb[7].mxu0  ;;  %v218_v6 = vpop.f32.mrb[7].mxu1 }
 0x12a   :  { %v179_v7 = vadd.f32 %v261_v40, %v178_v5  ;;  %v219_v8 = vadd.f32 %v261_v40, %v218_v6 }
 0x12b   :  { %234 = vst [vmem:[#allocation7 + $0x38] sm:$0xff] %v184_v3  ;;  %242 = vst [vmem:[#allocation7 + $0x78] sm:$0xff] %v224_v4 }
 0x12c   :  { %233 = vst [vmem:[#allocation7 + $0x30] sm:$0xff] %v179_v7  ;;  %241 = vst [vmem:[#allocation7 + $0x70] sm:$0xff] %v219_v8 }
 0x12d   :  { %458 = shalt.err (!%p455_p6)
}
 0x12e   :  { %s459_s15 = scalar_lea.hbm %s551_s3, 2048 }
 0x12f   :  { %p460_p7 = scmp.ne.s32.totalorder %s551_s3, %s459_s15  ;;  %p463_p8 = scmp.lt.u32.totalorder %s459_s15, %s551_s3 }
 0x131   :  { %p465_p9 = pnand %p463_p8, %p460_p7 }
 0x133   :  { %468 = shalt.err (!%p465_p9)
}
 0x134   :  { %254 = dma.vmem_to_hbm [thread:$0]  %s249_s11, 2048, %s551_s3, [#allocation4], %s476_s22, %s476_s22, %s477_s23  }
 0x135   :  { %473 = dma.done.wait [#allocation4], 2048  }
 0x136   :  { %474 = vsyncadd [#allocation4], 4294965248 }
 0x137   :  { %258 = vsyncpa [#allocation3], 1 }
 0x138   :  { %259 = vsyncpa [#allocation6], 1 }
 0x139   :  { %260 = vsyncpa [#allocation4], 1 }

</bundles_post_ra>
